<compile_context>
chip_gen: v7x
topology: tpu7x:2x2x1
jax: 0.10.0
libtpu: 0.0.40
codegen_flags: <defaults>
</compile_context>

<pallas_src>
import functools
import math

import jax
import jax.numpy as jnp
from jax.experimental import pallas as pl
from jax.experimental.pallas import tpu as pltpu

_LANE = 128
_SUBLANE = 8
_MIN_TILE = _SUBLANE * _LANE  # 1024 elems: minimal (8,128) alignment


def _ssp_stable_kernel(x_ref, o_ref, *, log_a, log_b):
    # ssp(x) = log(a*e^x + b) = logaddexp(x + log a, log b)   (valid for a,b > 0)
    xf = x_ref[...].astype(jnp.float32)
    o_ref[...] = jnp.logaddexp(xf + log_a, log_b).astype(o_ref.dtype)


def _ssp_direct_kernel(x_ref, o_ref, *, a, b):
    # Fallback matching the torch formula exactly for non-positive a/b.
    xf = x_ref[...].astype(jnp.float32)
    o_ref[...] = jnp.log(a * jnp.exp(xf) + b).astype(o_ref.dtype)


def ssp(x, a=0.5, b=0.5, *, block_rows=2048):
    """Shifted SoftPlus applied elementwise to an arbitrary-shape array."""
    orig_shape = x.shape
    orig_dtype = x.dtype
    n = x.size
    if n == 0:
        return x

    # Pad flat length only up to the minimal (8,128) alignment; aligned inputs
    # (n % 1024 == 0, e.g. typical NCHW activations) take a zero-copy path.
    n_pad = ((n + _MIN_TILE - 1) // _MIN_TILE) * _MIN_TILE
    x_flat = jnp.ravel(x)
    padded = n_pad != n
    if padded:
        x_flat = jnp.pad(x_flat, (0, n_pad - n))

    rows = n_pad // _LANE              # multiple of 8 by construction
    br = min(block_rows, rows)         # adaptive tile; stays a multiple of 8
    grid = (pl.cdiv(rows, br),)        # partial last block handled by masking

    x2d = x_flat.reshape(rows, _LANE)

    if a > 0.0 and b > 0.0:
        kernel = functools.partial(
            _ssp_stable_kernel, log_a=math.log(a), log_b=math.log(b)
        )
    else:
        kernel = functools.partial(_ssp_direct_kernel, a=float(a), b=float(b))

    out2d = pl.pallas_call(
        kernel,
        out_shape=jax.ShapeDtypeStruct((rows, _LANE), orig_dtype),
        grid=grid,
        in_specs=[pl.BlockSpec((br, _LANE), lambda i: (i, 0))],
        out_specs=pl.BlockSpec((br, _LANE), lambda i: (i, 0)),
        compiler_params=pltpu.CompilerParams(
            dimension_semantics=("parallel",),
        ),
    )(x2d)

    if padded:
        return out2d.reshape(-1)[:n].reshape(orig_shape)
    return out2d.reshape(orig_shape)


def ssp_ref(x, a=0.5, b=0.5):
    return jnp.log(a * jnp.exp(x.astype(jnp.float32)) + b).astype(x.dtype)


if __name__ == "__main__":
    key = jax.random.PRNGKey(0)
    # Shape consistent with an NCHW activation: batch=2, channels=4, 16x16.
    x = jax.random.normal(key, (2, 4, 16, 16), dtype=jnp.float32)
    out = jax.block_until_ready(ssp(x))
    ref = ssp_ref(x)
    assert out.shape == x.shape and out.dtype == x.dtype
    assert jnp.allclose(out, ref, atol=1e-5, rtol=1e-5)

    # Non-aligned shape exercises the (small) pad + slice path.
    x2 = jax.random.normal(jax.random.PRNGKey(1), (3, 5, 7), dtype=jnp.float32)
    out2 = jax.block_until_ready(ssp(x2))
    assert jnp.allclose(out2, ssp_ref(x2), atol=1e-5, rtol=1e-5)

    # Larger aligned shape exercises the multi-block (grid > 1) path.
    x3 = jax.random.normal(jax.random.PRNGKey(2), (8, 16, 64, 64), dtype=jnp.float32)
    out3 = jax.block_until_ready(ssp(x3))
    assert jnp.allclose(out3, ssp_ref(x3), atol=1e-5, rtol=1e-5)

    print("KERNEL_OK")
</pallas_src>

<mosaic_0001>
module attributes {stable_mosaic.version = 11 : i64} {
  func.func @_ssp_stable_kernel(%arg0: i32, %arg1: memref<16x128xf32, #tpu.memory_space<vmem>>, %arg2: memref<16x128xf32, #tpu.memory_space<vmem>>) attributes {dimension_semantics = [#tpu.dimension_semantics<parallel>], iteration_bounds = array<i64: 1>, scalar_prefetch = 0 : i64, scratch_operands = 0 : i64, tpu.core_type = #tpu.core_type<tc>, window_params = [{transform_indices = @transform_0, window_bounds = array<i64: 16, 128>}, {transform_indices = @transform_1, window_bounds = array<i64: 16, 128>}]} {
    %c0 = arith.constant 0 : index
    %c0_0 = arith.constant 0 : index
    %0 = vector.load %arg1[%c0, %c0_0] : memref<16x128xf32, #tpu.memory_space<vmem>>, vector<16x128xf32>
    %cst = arith.constant -0.693147182 : f32
    %1 = vector.broadcast %cst : f32 to vector<16x128xf32>
    %2 = arith.addf %0, %1 : vector<16x128xf32>
    %cst_1 = arith.constant -0.693147182 : f32
    %3 = vector.broadcast %cst_1 : f32 to vector<16x128xf32>
    %4 = arith.maximumf %2, %3 : vector<16x128xf32>
    %5 = vector.broadcast %cst_1 : f32 to vector<16x128xf32>
    %6 = arith.subf %2, %5 : vector<16x128xf32>
    %7 = arith.cmpf one, %6, %6 : vector<16x128xf32>
    %8 = vector.broadcast %cst_1 : f32 to vector<16x128xf32>
    %9 = arith.addf %2, %8 : vector<16x128xf32>
    %10 = math.absf %6 : vector<16x128xf32>
    %cst_2 = arith.constant 0.000000e+00 : f32
    %11 = vector.broadcast %cst_2 : f32 to vector<16x128xf32>
    %12 = arith.subf %11, %10 : vector<16x128xf32>
    %13 = math.exp %12 : vector<16x128xf32>
    %14 = math.log1p %13 : vector<16x128xf32>
    %15 = arith.addf %4, %14 : vector<16x128xf32>
    %16 = arith.select %7, %9, %15 : vector<16x128xi1>, vector<16x128xf32>
    %c0_3 = arith.constant 0 : index
    %c0_4 = arith.constant 0 : index
    %17 = vector.load %arg2[%c0_3, %c0_4] : memref<16x128xf32, #tpu.memory_space<vmem>>, vector<16x128xf32>
    tpu.vector_store %arg2[%c0_3, %c0_4], %16 {strides = array<i32>} : memref<16x128xf32, #tpu.memory_space<vmem>>, vector<16x128xf32>,
    return
  }
  func.func @transform_0(%arg0: i32) -> (i32, i32) {
    %c0_i32 = arith.constant 0 : i32
    %c0_i32_0 = arith.constant 0 : i32
    return %arg0, %c0_i32 : i32, i32
  }
  func.func @transform_1(%arg0: i32) -> (i32, i32) {
    %c0_i32 = arith.constant 0 : i32
    %c0_i32_0 = arith.constant 0 : i32
    return %arg0, %c0_i32 : i32, i32
  }
}

</mosaic_0001>

<bundles_post_ra>
// kernel: tpu_custom_call.1
= control target key start
LH: loop header
LB: loop body
LE: loop exit
PB: predicated region body
PF: predicated region fallthrough
CT: control target
= control target key end

     0   :  { %6 = vsyncpa [#allocation3], 0  ;;  %s190_s0 = inlined_call_operand.hbm [shape: f32[16,128], index: 0, kind: input, shape index: {}]   ;;  %s191_s1 = inlined_call_operand.hbm [shape: f32[16,128], index: 1, kind: output, shape index: {}]  }
   0x1   :  { %7 = vsyncpa [#allocation4], 0  ;;  %s146_s6 = smov [#allocation2]   ;;  %s98_s10 = scalar_lea.hbm %s190_s0, 256 }
   0x2   :  { %s13_s7 = sshll.u32 %s146_s6, 4  ;;  %p99_p0 = scmp.ne.s32.totalorder %s190_s0, %s98_s10  ;;  %s14_s7 = int_to_ptr.vmem [resolvable:$true] %s13_s7 }
   0x3   :  { %p102_p1 = scmp.lt.u32.totalorder %s98_s10, %s190_s0 }
   0x5   :  { %p104_p2 = pnand %p102_p1, %p99_p0 }
   0x7   :  { %107 = shalt.err (!%p104_p2)
}
   0x8   :  { %s108_s15 = scalar_lea.vmem %s14_s7, 256  ;;  %p113_p4 = scmp.lt.s32.totalorder %s14_s7, %s14_s7 }
   0x9   :  { %p109_p3 = scmp.ne.s32.totalorder %s14_s7, %s108_s15  ;;  %p114_p5 = scmp.lt.s32.totalorder %s108_s15, %s108_s15 }
   0xb   :  { %p115_p6 = por %p114_p5, %p113_p4 }
   0xd   :  { %p116_p7 = pnand %p115_p6, %p109_p3 }
   0xf   :  { %119 = shalt.err (!%p116_p7)
}
  0x10   :  { %s147_s16 = smov 128   ;;  %s148_s17 = smov 8  }
  0x11   :  { %19 = dma.hbm_to_vmem [thread:$0]  %s190_s0, 256, %s14_s7, [#allocation3], %s147_s16, %s147_s16, %s148_s17  }
  0x12   :  { %142 = dma.done.wait [#allocation3], 256  }
  0x13   :  { %143 = vsyncadd [#allocation3], 4294967040  ;;  %v23_v0 = vld [vmem:[#allocation2] sm:$0xff]  ;;  %v24_v1 = vld [vmem:[#allocation2 + $0x8] sm:$0xff]  ;;  %s149_s0 = smov [#allocation5]  }
  0x14   :  { %v25_v2 = vadd.f32 -0.6931472, %v23_v0  ;;  %v26_v3 = vadd.f32 -0.6931472, %v24_v1  ;;  %s72_s20 = sshll.u32 %s149_s0, 4  ;;  %s73_s20 = int_to_ptr.vmem [resolvable:$true] %s72_s20 }
  0x15   :  { %s120_s21 = scalar_lea.vmem %s73_s20, 256  ;;  %p125_p9 = scmp.lt.s32.totalorder %s73_s20, %s73_s20 }
  0x16   :  { %v84_v4 = vadd.f32 0.6931472, %v25_v2  ;;  %v85_v5 = vadd.f32 0.6931472, %v26_v3  ;;  %v27_v24 = vmax.f32 %v25_v2, -0.6931472  ;;  %p121_p8 = scmp.ne.s32.totalorder %s73_s20, %s120_s21  ;;  %p126_p10 = scmp.lt.s32.totalorder %s120_s21, %s120_s21 }
  0x17   :  { %v28_v28 = vmax.f32 %v26_v3, -0.6931472  ;;  %v33_v29 = vadd.f32 -0.6931472, %v25_v2  ;;  %v34_v32 = vadd.f32 -0.6931472, %v26_v3 }
  0x18   :  { %v35_v6 = vand.u32 2147483647, %v84_v4  ;;  %v36_v7 = vand.u32 2147483647, %v85_v5  ;;  %vm31_vm2 = vcmp.ne.f32.partialorder %v84_v4, %v84_v4  ;;  %vm32_vm3 = vcmp.ne.f32.partialorder %v85_v5, %v85_v5  ;;  %p127_p11 = por %p126_p10, %p125_p9 }
  0x1a   :  { %v37_v8 = vsub.f32 0.0, %v35_v6  ;;  %v38_v9 = vsub.f32 0.0, %v36_v7  ;;  %p128_p12 = pnand %p127_p11, %p121_p8 }
  0x1c   :  { %v39_v10 = vmul.f32 1.442695, %v37_v8  ;;  %v41_v11 = vmul.f32 1.442695, %v38_v9 }
  0x1e   :  { %90 = vpow2.f32 %v39_v10 }
  0x1f   :  { %92 = vpow2.f32 %v41_v11 }
  0x28   :  { %v91_v12 = vpop.eup %90 }
  0x29   :  { %v93_v13 = vpop.eup %92  ;;  %v43_v14 = vadd.f32 1.0, %v91_v12  ;;  %v46_v16 = vmul.f32 -0.5, %v91_v12  ;;  %v49_v19 = vand.u32 2147483647, %v91_v12 }
  0x2a   :  { %v52_v15 = vadd.f32 1.0, %v93_v13  ;;  %v55_v17 = vmul.f32 -0.5, %v93_v13  ;;  %v58_v21 = vand.u32 2147483647, %v93_v13 }
  0x2b   :  { %94 = vlog2.f32 %v43_v14  ;;  %v47_v18 = vadd.f32 1.0, %v46_v16  ;;  %vm50_vm0 = vcmp.lt.f32.partialorder %v49_v19, 0.0004427343 }
  0x2c   :  { %96 = vlog2.f32 %v52_v15  ;;  %v56_v20 = vadd.f32 1.0, %v55_v17  ;;  %vm59_vm1 = vcmp.lt.f32.partialorder %v58_v21, 0.0004427343 }
  0x2d   :  { %v48_v22 = vmul.f32 %v91_v12, %v47_v18 }
  0x2e   :  { %v57_v25 = vmul.f32 %v93_v13, %v56_v20 }
  0x35   :  { %v95_v23 = vpop.eup %94 }
  0x36   :  { %v97_v26 = vpop.eup %96  ;;  %v45_v27 = vmul.f32 0.6931472, %v95_v23 }
  0x37   :  { %v54_v30 = vmul.f32 0.6931472, %v97_v26 }
  0x38   :  { %v51_v31 = vsel %vm50_vm0, %v48_v22, %v45_v27 }
  0x39   :  { %v61_v33 = vadd.f32 %v51_v31, %v27_v24  ;;  %v60_v34 = vsel %vm59_vm1, %v57_v25, %v54_v30 }
  0x3a   :  { %v62_v35 = vadd.f32 %v60_v34, %v28_v28 }
  0x3b   :  { %v63_v36 = vsel %vm31_vm2, %v33_v29, %v61_v33 }
  0x3c   :  { %65 = vst [vmem:[#allocation5] sm:$0xff] %v63_v36  ;;  %v64_v37 = vsel %vm32_vm3, %v34_v32, %v62_v35 }
  0x3d   :  { %66 = vst [vmem:[#allocation5 + $0x8] sm:$0xff] %v64_v37 }
  0x3e   :  { %131 = shalt.err (!%p128_p12)
}
  0x3f   :  { %s132_s24 = scalar_lea.hbm %s191_s1, 256 }
  0x40   :  { %p133_p13 = scmp.ne.s32.totalorder %s191_s1, %s132_s24  ;;  %p136_p0 = scmp.lt.u32.totalorder %s132_s24, %s191_s1 }
  0x42   :  { %p138_p1 = pnand %p136_p0, %p133_p13 }
  0x44   :  { %141 = shalt.err (!%p138_p1)
}
  0x45   :  { %78 = dma.vmem_to_hbm [thread:$0]  %s73_s20, 256, %s191_s1, [#allocation4], %s147_s16, %s147_s16, %s148_s17  }
  0x46   :  { %144 = dma.done.wait [#allocation4], 256  }
  0x47   :  { %145 = vsyncadd [#allocation4], 4294967040 }
  0x48   :  { %82 = vsyncpa [#allocation3], 1 }
  0x49   :  { %83 = vsyncpa [#allocation4], 1 }

</bundles_post_ra>
